<compile_context>
chip_gen: v6e
topology: v6e:2x2x1
jax: 0.10.0
libtpu: 0.0.40
codegen_flags: <defaults>
</compile_context>

<pallas_src>
import jax
import jax.numpy as jnp
from jax.experimental import pallas as pl
from jax.experimental.pallas import tpu as pltpu

INPUT_SIZE = 5
OUTPUT_SIZE = 2

# Hard cap on the batch-tile width. 256K columns keeps the double-buffered working
# set (~128 B/column) around 32 MiB, comfortably under v7x's 64 MiB VMEM per TC.
_TILE_B_CAP = 256 * 1024
_DEFAULT_TILE_B = 128 * 1024      # sweet spot per review (sweep 64K-256K)
_MIN_TILE_B_FOR_SPLIT = 8 * 1024  # never shrink tiles below this just to add grid steps
_MIN_PARALLEL_TILES = 4           # give v7x's two TensorCores >=2 tiles each


def _round_up(n, m):
    return ((n + m - 1) // m) * m


def _choose_tiling(batch, tile_b_max):
    """Balanced, 128-aligned batch tiling (review items: tile size / balance / v7x)."""
    tile_b_max = max(128, min(int(tile_b_max), _TILE_B_CAP))
    b128 = _round_up(batch, 128)
    n_tiles = pl.cdiv(b128, tile_b_max)
    # When there is enough work, use >= 4 tiles so the "parallel" batch axis can be
    # split across both TensorCores on v7x.
    if n_tiles < _MIN_PARALLEL_TILES and b128 >= _MIN_PARALLEL_TILES * _MIN_TILE_B_FOR_SPLIT:
        n_tiles = _MIN_PARALLEL_TILES
    # Common tile size, rounded to the 128-lane granule -> last tile is balanced
    # instead of mostly padding.
    tile_b = _round_up(pl.cdiv(b128, n_tiles), 128)
    b_pad = n_tiles * tile_b
    return tile_b, b_pad, n_tiles


def _linear_kernel(xT_ref, w_ref, b_ref, oT_ref):
    # o^T tile = W @ x^T tile + b ; batch on lanes -> lane-dense unmasked stores.
    acc = jnp.dot(w_ref[...], xT_ref[...], preferred_element_type=jnp.float32)
    oT_ref[...] = (acc + b_ref[...]).astype(oT_ref.dtype)  # b is (out,1) -> lane broadcast


def linear_forward(x, weight, bias, *, tile_b=_DEFAULT_TILE_B):
    """y = x @ W^T + b  (PyTorch nn.Linear semantics).

    x:      [B, in_features]
    weight: [out_features, in_features]   (PyTorch nn.Linear layout)
    bias:   [out_features]
    returns [B, out_features] float32
    """
    B, in_f = x.shape
    out_f = weight.shape[0]

    tile_b, b_pad, n_tiles = _choose_tiling(B, tile_b)

    # Pad along the batch (major) axis first, then transpose, in one expression so
    # XLA can fuse pad+transpose into a single producer fusion of the kernel operand.
    xT = jnp.pad(x.astype(jnp.float32), ((0, b_pad - B), (0, 0))).T   # [in_f, b_pad]
    b2d = bias.reshape(out_f, 1).astype(jnp.float32)                   # [out_f, 1]

    # Double-buffered working set: x^T stream + o^T stream, both sublane-padded to 8
    # rows of f32 => ~128 B per batch column, plus slack for weights/bias/bookkeeping.
    vmem_needed = 128 * tile_b + (4 << 20)
    vmem_limit = min(max(32 << 20, vmem_needed), 48 << 20)  # <= 48 MiB: headroom on v7x

    oT = pl.pallas_call(
        _linear_kernel,
        out_shape=jax.ShapeDtypeStruct((out_f, b_pad), jnp.float32),
        grid=(n_tiles,),
        in_specs=[
            # x^T streams along the batch/lane axis; auto double-buffered by Pallas.
            pl.BlockSpec((in_f, tile_b), lambda i: (0, i)),
            # Weights & bias: constant index_map -> VMEM-resident across the grid.
            pl.BlockSpec((out_f, in_f), lambda i: (0, 0)),
            pl.BlockSpec((out_f, 1), lambda i: (0, 0)),
        ],
        out_specs=pl.BlockSpec((out_f, tile_b), lambda i: (0, i)),
        compiler_params=pltpu.CompilerParams(
            dimension_semantics=("parallel",),   # disjoint output blocks per step
            vmem_limit_bytes=vmem_limit,
        ),
    )(xT, weight.astype(jnp.float32), b2d)

    return oT[:, :B].T  # back to [B, out_features]; padded columns sliced off


def init_params(key, in_f=INPUT_SIZE, out_f=OUTPUT_SIZE):
    """Deterministic init mimicking nn.Linear default (uniform +/- 1/sqrt(fan_in))."""
    k_w, k_b = jax.random.split(key)
    bound = 1.0 / jnp.sqrt(float(in_f))
    weight = jax.random.uniform(k_w, (out_f, in_f), jnp.float32, -bound, bound)
    bias = jax.random.uniform(k_b, (out_f,), jnp.float32, -bound, bound)
    return weight, bias


if __name__ == "__main__":
    key = jax.random.PRNGKey(0)
    kx, kp = jax.random.split(key)

    batch = 8
    x = jax.random.normal(kx, (batch, INPUT_SIZE), jnp.float32)
    weight, bias = init_params(kp)

    out = jax.block_until_ready(linear_forward(x, weight, bias))

    # Pure-JAX reference (PyTorch nn.Linear: y = x @ W^T + b).
    ref = x @ weight.T + bias
    assert out.shape == (batch, OUTPUT_SIZE)
    assert jnp.allclose(out, ref, atol=1e-5, rtol=1e-5)

    print("KERNEL_OK")
</pallas_src>

<mosaic_0001>
module attributes {stable_mosaic.version = 11 : i64} {
  func.func @_linear_kernel(%arg0: i32, %arg1: memref<5x128xf32, #tpu.memory_space<vmem>>, %arg2: memref<2x5xf32, #tpu.memory_space<vmem>>, %arg3: memref<2x1xf32, #tpu.memory_space<vmem>>, %arg4: memref<2x128xf32, #tpu.memory_space<vmem>>) attributes {dimension_semantics = [#tpu.dimension_semantics<parallel>], iteration_bounds = array<i64: 1>, scalar_prefetch = 0 : i64, scratch_operands = 0 : i64, tpu.core_type = #tpu.core_type<tc>, window_params = [{transform_indices = @transform_0, window_bounds = array<i64: 5, 128>}, {pipeline_mode = #tpu.pipeline_mode<synchronous>, transform_indices = @transform_1, window_bounds = array<i64: 2, 5>}, {pipeline_mode = #tpu.pipeline_mode<synchronous>, transform_indices = @transform_2, window_bounds = array<i64: 2, 1>}, {transform_indices = @transform_3, window_bounds = array<i64: 2, 128>}]} {
    %c0 = arith.constant 0 : index
    %c0_0 = arith.constant 0 : index
    %0 = vector.load %arg2[%c0, %c0_0] : memref<2x5xf32, #tpu.memory_space<vmem>>, vector<2x5xf32>
    %c0_1 = arith.constant 0 : index
    %c0_2 = arith.constant 0 : index
    %1 = vector.load %arg1[%c0_1, %c0_2] : memref<5x128xf32, #tpu.memory_space<vmem>>, vector<5x128xf32>
    %cst = arith.constant dense<0.000000e+00> : vector<2x128xf32>
    %2 = tpu.matmul %0, %1, %cst {dimension_numbers = #tpu.dot_dimension_numbers<[1], [0], [0], [1], [0, 0, 1, 1], [], []>} : vector<2x5xf32>, vector<5x128xf32>, vector<2x128xf32> -> vector<2x128xf32>
    %c0_3 = arith.constant 0 : index
    %c0_4 = arith.constant 0 : index
    %3 = vector.load %arg3[%c0_3, %c0_4] : memref<2x1xf32, #tpu.memory_space<vmem>>, vector<2x1xf32>
    %4 = vector.broadcast %3 : vector<2x1xf32> to vector<2x128xf32>
    %5 = arith.addf %2, %4 : vector<2x128xf32>
    %c0_5 = arith.constant 0 : index
    %c0_6 = arith.constant 0 : index
    %6 = vector.load %arg4[%c0_5, %c0_6] : memref<2x128xf32, #tpu.memory_space<vmem>>, vector<2x128xf32>
    tpu.vector_store %arg4[%c0_5, %c0_6], %5 {strides = array<i32>} : memref<2x128xf32, #tpu.memory_space<vmem>>, vector<2x128xf32>,
    return
  }
  func.func @transform_0(%arg0: i32) -> (i32, i32) {
    %c0_i32 = arith.constant 0 : i32
    %c0_i32_0 = arith.constant 0 : i32
    return %c0_i32, %arg0 : i32, i32
  }
  func.func @transform_1(%arg0: i32) -> (i32, i32) {
    %c0_i32 = arith.constant 0 : i32
    %c0_i32_0 = arith.constant 0 : i32
    %c0_i32_1 = arith.constant 0 : i32
    return %c0_i32, %c0_i32_0 : i32, i32
  }
  func.func @transform_2(%arg0: i32) -> (i32, i32) {
    %c0_i32 = arith.constant 0 : i32
    %c0_i32_0 = arith.constant 0 : i32
    %c0_i32_1 = arith.constant 0 : i32
    return %c0_i32, %c0_i32_0 : i32, i32
  }
  func.func @transform_3(%arg0: i32) -> (i32, i32) {
    %c0_i32 = arith.constant 0 : i32
    %c0_i32_0 = arith.constant 0 : i32
    return %c0_i32, %arg0 : i32, i32
  }
}

</mosaic_0001>

<bundles_post_ra>
// kernel: tpu_custom_call.1
= control target key start
LH: loop header
LB: loop body
LE: loop exit
PB: predicated region body
PF: predicated region fallthrough
CT: control target
= control target key end

     0   :  { %8 = vsyncpa [#allocation3], 0  ;;  %s225_s0 = inlined_call_operand.hbm [shape: f32[5,128], index: 0, kind: input, shape index: {}]   ;;  %s226_s1 = inlined_call_operand.vmem [shape: f32[2,5], index: 1, kind: input, shape index: {}]   ;;  %s227_s2 = inlined_call_operand.vmem [shape: f32[2,1], index: 2, kind: input, shape index: {}]   ;;  %s228_s3 = inlined_call_operand.hbm [shape: f32[2,128], index: 3, kind: output, shape index: {}]  }
   0x1   :  { %9 = vsyncpa [#allocation4], 0  ;;  %s188_s12 = smov [#allocation2]  }
   0x2   :  { %s16_s13 = sshll.u32 %s188_s12, 4  ;;  %s17_s13 = int_to_ptr.vmem [resolvable:$true] %s16_s13 }
   0x3   :  { %s152_s14 = scalar_lea.vmem %s17_s13, 128  ;;  %p157_p1 = scmp.lt.s32.totalorder %s17_s13, %s17_s13 }
   0x4   :  { %p153_p0 = scmp.ne.s32.totalorder %s17_s13, %s152_s14  ;;  %p158_p2 = scmp.lt.s32.totalorder %s152_s14, %s152_s14 }
   0x6   :  { %p159_p3 = por %p158_p2, %p157_p1 }
   0x8   :  { %p160_p4 = pnand %p159_p3, %p153_p0 }
   0xa   :  { %163 = shalt.err (!%p160_p4)
}
   0xb   :  { %19 = dma.hbm_to_vmem [thread:$0]  %s225_s0, 128, %s17_s13, [#allocation3]  }
   0xc   :  { %184 = dma.done.wait [#allocation3], 128  }
   0xd   :  { %185 = vsyncadd [#allocation3], 4294967168  ;;  %v189_v0 = vmov 0.0   ;;  %vm190_vm0 = vmmov 0   ;;  %v191_v1 = vmov 0   ;;  %vm39_vm1 = vcmask 1044480  }
   0xe   :  { %133 = vmatprep.subr.mxu0 %v189_v0  ;;  %135 = vmatprep.mubr.msk.f32.mxu0 %vm190_vm0, %v189_v0  ;;  %vm35_vm2 = vcmask 39936   ;;  %v28_v2 = vld [vmem:[#allocation2] sm:$0x1f]  ;;  %s192_s0 = smov [#allocation5]  }
   0xf   :  { %143 = vset.pattern.permute.xlu0 %v191_v1  ;;  %v27_v3 = vld [vmem:[%s226_s1] sm:$0x3]  ;;  %134 = vmatpush3.msk.msra.mxu0 %vm39_vm1, %v28_v2  ;;  %s120_s21 = sshll.u32 %s192_s0, 4  ;;  %s121_s21 = int_to_ptr.vmem [resolvable:$true] %s120_s21 }
  0x10   :  { %v29_v4 = vld [vmem:[%s227_s2] sm:$0x3]  ;;  %136 = vmatmul.mubr.msk.f32.vlgmr.msra.gmra.mxu0 %vm35_vm2, %v27_v3  ;;  %s164_s22 = scalar_lea.vmem %s121_s21, 32  ;;  %p169_p6 = scmp.lt.s32.totalorder %s121_s21, %s121_s21 }
  0x11   :  { %32 = vperm.xlu0 %143, %v29_v4   ;;  %p165_p5 = scmp.ne.s32.totalorder %s121_s21, %s164_s22  ;;  %p170_p7 = scmp.lt.s32.totalorder %s164_s22, %s164_s22 }
  0x13   :  { %p171_p8 = por %p170_p7, %p169_p6 }
  0x15   :  { %p172_p9 = pnand %p171_p8, %p165_p5 }
  0x8c   :  { %v33_v5 = vpop.permute.xlu0 %32 }
  0xd0   :  { %v109_v6 = vpop.f32.mrf.mxu0 }
  0xd1   :  { %v110_v7 = vadd.f32 %v109_v6, %v33_v5 }
  0xd2   :  { %v137_v8 = vpop.f32.mrf.mxu0 }
  0xd3   :  { %113 = vst [vmem:[#allocation5] sm:$0x3] %v110_v7 }
  0xd4   :  { %175 = shalt.err (!%p172_p9)
}
  0xd5   :  { %123 = dma.vmem_to_hbm [thread:$0]  %s121_s21, 32, %s228_s3, [#allocation4]  }
  0xd6   :  { %186 = dma.done.wait [#allocation4], 32  }
  0xd7   :  { %187 = vsyncadd [#allocation4], 4294967264 }
  0xd8   :  { %127 = vsyncpa [#allocation3], 1 }
  0xd9   :  { %128 = vsyncpa [#allocation4], 1 }

</bundles_post_ra>
